<compile_context>
chip_gen: v6e
topology: v6e:2x2x1
jax: 0.10.0
libtpu: 0.0.40
codegen_flags: <defaults>
</compile_context>

<pallas_src>
import jax
import jax.numpy as jnp
from jax.experimental import pallas as pl
from jax.experimental.pallas import tpu as pltpu


# ----------------------------- Pallas kernel --------------------------------

def _fused_vectorizer_kernel(comb_counts_ref, act_counts_ref,
                             clause_emb_ref, action_emb_ref,
                             comb_meta_ref, act_meta_ref,
                             nact_ref, pis_ref,
                             comb_out_ref, act_out_ref, pis_out_ref):
    """Single fused kernel.

    comb_counts: (Rc, tk) bf16 — clause rows followed by nc-clause rows.
    act_counts:  (Ra, tk) bf16
    *_emb:       (tk, feat) bf16
    *_meta:      (rows, 2) int32 — col 0 = item index within batch,
                                   col 1 = true item count for that batch elem.
    nact:        (B, 1) int32, pis: (B, max_actions) f32.
    Outputs are f32 accumulators resident across the vocab (k) grid axis.
    """
    k = pl.program_id(0)
    nk = pl.num_programs(0)

    @pl.when(k == 0)
    def _init():
        comb_out_ref[...] = jnp.zeros_like(comb_out_ref)
        act_out_ref[...] = jnp.zeros_like(act_out_ref)
        # pi zero-padding (done once; the pis block is resident across k).
        col = jax.lax.broadcasted_iota(jnp.int32, pis_ref.shape, 1)
        pis_out_ref[...] = jnp.where(col < nact_ref[...], pis_ref[...], 0.0)

    # Lane-dense MXU matmuls, f32 accumulation into the resident outputs.
    comb_out_ref[...] += jnp.dot(comb_counts_ref[...], clause_emb_ref[...],
                                 preferred_element_type=jnp.float32)
    act_out_ref[...] += jnp.dot(act_counts_ref[...], action_emb_ref[...],
                                preferred_element_type=jnp.float32)

    @pl.when(k == nk - 1)
    def _finalize():
        # Zero out rows belonging to padded items (item_idx >= num_items[b]).
        comb_valid = comb_meta_ref[:, 0:1] < comb_meta_ref[:, 1:2]   # (Rc, 1)
        comb_out_ref[...] = jnp.where(comb_valid, comb_out_ref[...], 0.0)
        act_valid = act_meta_ref[:, 0:1] < act_meta_ref[:, 1:2]      # (Ra, 1)
        act_out_ref[...] = jnp.where(act_valid, act_out_ref[...], 0.0)


# ------------------------------ forward glue --------------------------------

def _row_meta(num_items, max_items):
    """Per-flattened-row (item-index-within-batch, true-item-count) int32 pairs."""
    b = num_items.shape[0]
    item_idx = jnp.tile(jnp.arange(max_items, dtype=jnp.int32), b)
    limit = jnp.repeat(num_items.astype(jnp.int32), max_items)
    return jnp.stack([item_idx, limit], axis=1)                      # (b*max_items, 2)


def vectorizer_module_forward(params,
                              clause_counts, num_clauses,
                              action_counts, num_actions,
                              nc_clause_counts, num_nc_clauses,
                              pis_raw, vs,
                              *, k_tile=512, vmem_limit_bytes=32 * 1024 * 1024):
    """Mirror of VectorizerModule.forward (process_state_only=False).

    Returns:
      (clause_boards, num_clause_boards, action_boards, num_action_boards,
       nc_clause_boards, num_nc_clause_boards, target_pis, target_vs)
    """
    # TODO(synk): the real BaseVectorizer parses symbolic clauses on the host;
    # the clause->token-count featurization here is synthetic and deterministic.
    B, MC, V = clause_counts.shape
    _, MA, _ = action_counts.shape
    _, MNC, _ = nc_clause_counts.shape
    CF = params["clause_emb"].shape[1]
    AF = params["action_emb"].shape[1]
    RC = B * (MC + MNC)
    RA = B * MA

    # Flatten batch+item rows; clause and nc-clause share the clause embedding,
    # so their rows go into one slab. Feed the MXU bf16 (counts are exact ints).
    comb_counts = jnp.concatenate(
        [clause_counts.reshape(B * MC, V),
         nc_clause_counts.reshape(B * MNC, V)], axis=0).astype(jnp.bfloat16)
    act_counts = action_counts.reshape(B * MA, V).astype(jnp.bfloat16)
    clause_emb = params["clause_emb"].astype(jnp.bfloat16)
    action_emb = params["action_emb"].astype(jnp.bfloat16)

    comb_meta = jnp.concatenate(
        [_row_meta(num_clauses, MC), _row_meta(num_nc_clauses, MNC)], axis=0)
    act_meta = _row_meta(num_actions, MA)
    nact = num_actions.astype(jnp.int32).reshape(B, 1)
    pis_f32 = pis_raw.astype(jnp.float32)

    # Vocab (contraction) tiling: single step at toy sizes; 512-wide K tiles
    # with accumulation when vocab is large (keeps v7x 64 MiB VMEM happy).
    if V <= k_tile:
        tk = V
    else:
        assert V % k_tile == 0, "vocab must be a multiple of k_tile when tiled"
        tk = k_tile
    nk = V // tk

    grid_spec = pltpu.PrefetchScalarGridSpec(
        num_scalar_prefetch=0,
        grid=(nk,),
        in_specs=[
            pl.BlockSpec((RC, tk), lambda k: (0, k)),     # combined counts
            pl.BlockSpec((RA, tk), lambda k: (0, k)),     # action counts
            pl.BlockSpec((tk, CF), lambda k: (k, 0)),     # clause embedding
            pl.BlockSpec((tk, AF), lambda k: (k, 0)),     # action embedding
            pl.BlockSpec((RC, 2), lambda k: (0, 0)),      # combined row meta
            pl.BlockSpec((RA, 2), lambda k: (0, 0)),      # action row meta
            pl.BlockSpec((B, 1), lambda k: (0, 0)),       # num_actions
            pl.BlockSpec((B, MA), lambda k: (0, 0)),      # raw pis
        ],
        out_specs=[
            pl.BlockSpec((RC, CF), lambda k: (0, 0)),     # clause+nc features
            pl.BlockSpec((RA, AF), lambda k: (0, 0)),     # action features
            pl.BlockSpec((B, MA), lambda k: (0, 0)),      # padded pis
        ],
    )

    comb_feats, act_feats, target_pis = pl.pallas_call(
        _fused_vectorizer_kernel,
        out_shape=(jax.ShapeDtypeStruct((RC, CF), jnp.float32),
                   jax.ShapeDtypeStruct((RA, AF), jnp.float32),
                   jax.ShapeDtypeStruct((B, MA), jnp.float32)),
        grid_spec=grid_spec,
        compiler_params=pltpu.CompilerParams(
            dimension_semantics=("arbitrary",),
            vmem_limit_bytes=vmem_limit_bytes),
    )(comb_counts, act_counts, clause_emb, action_emb,
      comb_meta, act_meta, nact, pis_f32)

    # Wrapper-side layout plumbing to the PyTorch (batch, features, max_items)
    # convention — cheap XLA ops instead of per-step in-kernel transposes.
    clause_boards = jnp.transpose(
        comb_feats[:B * MC].reshape(B, MC, CF), (0, 2, 1))
    nc_clause_boards = jnp.transpose(
        comb_feats[B * MC:].reshape(B, MNC, CF), (0, 2, 1))
    action_boards = jnp.transpose(
        act_feats.reshape(B, MA, AF), (0, 2, 1))

    target_vs = vs.astype(jnp.float32)
    num_clause_boards = num_clauses.reshape(-1, 1).astype(jnp.int32)
    num_action_boards = num_actions.reshape(-1, 1).astype(jnp.int32)
    num_nc_clause_boards = num_nc_clauses.reshape(-1, 1).astype(jnp.int32)

    return (clause_boards, num_clause_boards, action_boards, num_action_boards,
            nc_clause_boards, num_nc_clause_boards, target_pis, target_vs)


# pure-JAX reference for correctness checking (same bf16 feed as the kernel)
def _reference_vectorize(counts, num_items, embedding):
    c = counts.astype(jnp.bfloat16).astype(jnp.float32)
    e = embedding.astype(jnp.bfloat16).astype(jnp.float32)
    feats = jnp.einsum("biv,vf->bif", c, e)                  # (B, max_items, feat)
    mask = (jnp.arange(counts.shape[1])[None, :] < num_items[:, None])
    feats = feats * mask[:, :, None]
    return jnp.transpose(feats, (0, 2, 1))                   # (B, feat, max_items)


if __name__ == "__main__":
    B = 2
    VOCAB = 32
    CLAUSE_FEAT = 32
    ACTION_FEAT = 16
    MAX_CLAUSES = 16
    MAX_ACTIONS = 8
    MAX_NC_CLAUSES = 4

    key = jax.random.PRNGKey(0)
    (k_cemb, k_aemb, k_cc, k_ac, k_nc, k_nums, k_pis, k_vs) = jax.random.split(key, 8)

    # Deterministic "vectorizer" parameters (embedding tables).
    params = {
        "clause_emb": jax.random.normal(k_cemb, (VOCAB, CLAUSE_FEAT), jnp.float32) * 0.1,
        "action_emb": jax.random.normal(k_aemb, (VOCAB, ACTION_FEAT), jnp.float32) * 0.1,
    }

    # Synthetic bag-of-token counts for processed clauses / actions / NC clauses.
    clause_counts = jax.random.randint(k_cc, (B, MAX_CLAUSES, VOCAB), 0, 3).astype(jnp.float32)
    action_counts = jax.random.randint(k_ac, (B, MAX_ACTIONS, VOCAB), 0, 3).astype(jnp.float32)
    nc_counts = jax.random.randint(k_nc, (B, MAX_NC_CLAUSES, VOCAB), 0, 3).astype(jnp.float32)

    kn1, kn2, kn3 = jax.random.split(k_nums, 3)
    num_clauses = jax.random.randint(kn1, (B,), 1, MAX_CLAUSES + 1)
    num_actions = jax.random.randint(kn2, (B,), 1, MAX_ACTIONS + 1)
    num_nc_clauses = jax.random.randint(kn3, (B,), 1, MAX_NC_CLAUSES + 1)

    # Ragged pis represented as a raw (B, MAX_ACTIONS) buffer; entries past
    # num_actions[b] are garbage that the kernel must zero (the zero-padding).
    pis_raw = jax.random.uniform(k_pis, (B, MAX_ACTIONS), jnp.float32)
    vs = jax.random.uniform(k_vs, (B,), jnp.float32, -1.0, 1.0)

    forward = jax.jit(vectorizer_module_forward)
    out = forward(params,
                  clause_counts, num_clauses,
                  action_counts, num_actions,
                  nc_counts, num_nc_clauses,
                  pis_raw, vs)
    out = jax.block_until_ready(out)

    (clause_boards, num_clause_boards, action_boards, num_action_boards,
     nc_clause_boards, num_nc_clause_boards, target_pis, target_vs) = out

    # Correctness check against pure-JAX reference.
    ref_cb = _reference_vectorize(clause_counts, num_clauses, params["clause_emb"])
    ref_ab = _reference_vectorize(action_counts, num_actions, params["action_emb"])
    ref_nb = _reference_vectorize(nc_counts, num_nc_clauses, params["clause_emb"])
    ref_pis = jnp.where(jnp.arange(MAX_ACTIONS)[None, :] < num_actions[:, None],
                        pis_raw, 0.0)

    assert clause_boards.shape == (B, CLAUSE_FEAT, MAX_CLAUSES)
    assert action_boards.shape == (B, ACTION_FEAT, MAX_ACTIONS)
    assert nc_clause_boards.shape == (B, CLAUSE_FEAT, MAX_NC_CLAUSES)
    assert target_pis.shape == (B, MAX_ACTIONS) and target_vs.shape == (B,)
    assert num_clause_boards.shape == (B, 1)
    assert jnp.allclose(clause_boards, ref_cb, atol=1e-4)
    assert jnp.allclose(action_boards, ref_ab, atol=1e-4)
    assert jnp.allclose(nc_clause_boards, ref_nb, atol=1e-4)
    assert jnp.allclose(target_pis, ref_pis, atol=1e-6)

    print("KERNEL_OK")
</pallas_src>

<mosaic_0001>
module attributes {stable_mosaic.version = 11 : i64} {
  func.func @_fused_vectorizer_kernel(%arg0: i32, %arg1: memref<40x32xbf16, #tpu.memory_space<vmem>>, %arg2: memref<16x32xbf16, #tpu.memory_space<vmem>>, %arg3: memref<32x32xbf16, #tpu.memory_space<vmem>>, %arg4: memref<32x16xbf16, #tpu.memory_space<vmem>>, %arg5: memref<40x2xi32, #tpu.memory_space<vmem>>, %arg6: memref<16x2xi32, #tpu.memory_space<vmem>>, %arg7: memref<2x1xi32, #tpu.memory_space<vmem>>, %arg8: memref<2x8xf32, #tpu.memory_space<vmem>>, %arg9: memref<40x32xf32, #tpu.memory_space<vmem>>, %arg10: memref<16x16xf32, #tpu.memory_space<vmem>>, %arg11: memref<2x8xf32, #tpu.memory_space<vmem>>) attributes {dimension_semantics = [#tpu.dimension_semantics<arbitrary>], iteration_bounds = array<i64: 1>, scalar_prefetch = 0 : i64, scratch_operands = 0 : i64, tpu.core_type = #tpu.core_type<tc>, window_params = [{transform_indices = @transform_0, window_bounds = array<i64: 40, 32>}, {transform_indices = @transform_1, window_bounds = array<i64: 16, 32>}, {transform_indices = @transform_2, window_bounds = array<i64: 32, 32>}, {transform_indices = @transform_3, window_bounds = array<i64: 32, 16>}, {pipeline_mode = #tpu.pipeline_mode<synchronous>, transform_indices = @transform_4, window_bounds = array<i64: 40, 2>}, {pipeline_mode = #tpu.pipeline_mode<synchronous>, transform_indices = @transform_5, window_bounds = array<i64: 16, 2>}, {pipeline_mode = #tpu.pipeline_mode<synchronous>, transform_indices = @transform_6, window_bounds = array<i64: 2, 1>}, {pipeline_mode = #tpu.pipeline_mode<synchronous>, transform_indices = @transform_7, window_bounds = array<i64: 2, 8>}, {pipeline_mode = #tpu.pipeline_mode<synchronous>, transform_indices = @transform_8, window_bounds = array<i64: 40, 32>}, {pipeline_mode = #tpu.pipeline_mode<synchronous>, transform_indices = @transform_9, window_bounds = array<i64: 16, 16>}, {pipeline_mode = #tpu.pipeline_mode<synchronous>, transform_indices = @transform_10, window_bounds = array<i64: 2, 8>}]} {
    %c0_i32 = arith.constant 0 : i32
    %0 = arith.cmpi eq, %arg0, %c0_i32 : i32
    %1 = arith.extui %0 : i1 to i32
    %c0_i32_0 = arith.constant 0 : i32
    %2 = arith.cmpi ne, %1, %c0_i32_0 : i32
    scf.if %2 {
      %cst_19 = arith.constant 0.000000e+00 : f32
      %18 = vector.broadcast %cst_19 : f32 to vector<40x32xf32>
      %c0_20 = arith.constant 0 : index
      %c0_21 = arith.constant 0 : index
      %19 = vector.load %arg9[%c0_20, %c0_21] : memref<40x32xf32, #tpu.memory_space<vmem>>, vector<40x32xf32>
      tpu.vector_store %arg9[%c0_20, %c0_21], %18 {strides = array<i32>} : memref<40x32xf32, #tpu.memory_space<vmem>>, vector<40x32xf32>,
      %cst_22 = arith.constant 0.000000e+00 : f32
      %20 = vector.broadcast %cst_22 : f32 to vector<16x16xf32>
      %c0_23 = arith.constant 0 : index
      %c0_24 = arith.constant 0 : index
      %21 = vector.load %arg10[%c0_23, %c0_24] : memref<16x16xf32, #tpu.memory_space<vmem>>, vector<16x16xf32>
      tpu.vector_store %arg10[%c0_23, %c0_24], %20 {strides = array<i32>} : memref<16x16xf32, #tpu.memory_space<vmem>>, vector<16x16xf32>,
      %22 = tpu.iota {dimensions = array<i32: 1>} : vector<2x8xi32>
      %c0_25 = arith.constant 0 : index
      %c0_26 = arith.constant 0 : index
      %23 = vector.load %arg7[%c0_25, %c0_26] : memref<2x1xi32, #tpu.memory_space<vmem>>, vector<2x1xi32>
      %24 = vector.broadcast %23 : vector<2x1xi32> to vector<2x8xi32>
      %25 = arith.cmpi slt, %22, %24 : vector<2x8xi32>
      %c0_27 = arith.constant 0 : index
      %c0_28 = arith.constant 0 : index
      %26 = vector.load %arg8[%c0_27, %c0_28] : memref<2x8xf32, #tpu.memory_space<vmem>>, vector<2x8xf32>
      %cst_29 = arith.constant 0.000000e+00 : f32
      %27 = vector.broadcast %cst_29 : f32 to vector<2x8xf32>
      %28 = arith.select %25, %26, %27 : vector<2x8xi1>, vector<2x8xf32>
      %c0_30 = arith.constant 0 : index
      %c0_31 = arith.constant 0 : index
      %29 = vector.load %arg11[%c0_30, %c0_31] : memref<2x8xf32, #tpu.memory_space<vmem>>, vector<2x8xf32>
      tpu.vector_store %arg11[%c0_30, %c0_31], %28 {strides = array<i32>} : memref<2x8xf32, #tpu.memory_space<vmem>>, vector<2x8xf32>,
    } else {
    }
    %c0 = arith.constant 0 : index
    %c0_1 = arith.constant 0 : index
    %3 = vector.load %arg9[%c0, %c0_1] : memref<40x32xf32, #tpu.memory_space<vmem>>, vector<40x32xf32>
    %c0_2 = arith.constant 0 : index
    %c0_3 = arith.constant 0 : index
    %4 = vector.load %arg1[%c0_2, %c0_3] : memref<40x32xbf16, #tpu.memory_space<vmem>>, vector<40x32xbf16>
    %c0_4 = arith.constant 0 : index
    %c0_5 = arith.constant 0 : index
    %5 = vector.load %arg3[%c0_4, %c0_5] : memref<32x32xbf16, #tpu.memory_space<vmem>>, vector<32x32xbf16>
    %cst = arith.constant dense<0.000000e+00> : vector<40x32xf32>
    %6 = tpu.matmul %4, %5, %cst {dimension_numbers = #tpu.dot_dimension_numbers<[1], [0], [0], [1], [0, 0, 1, 1], [], []>} : vector<40x32xbf16>, vector<32x32xbf16>, vector<40x32xf32> -> vector<40x32xf32>
    %7 = arith.addf %3, %6 : vector<40x32xf32>
    %c0_6 = arith.constant 0 : index
    %c0_7 = arith.constant 0 : index
    %8 = vector.load %arg9[%c0_6, %c0_7] : memref<40x32xf32, #tpu.memory_space<vmem>>, vector<40x32xf32>
    tpu.vector_store %arg9[%c0_6, %c0_7], %7 {strides = array<i32>} : memref<40x32xf32, #tpu.memory_space<vmem>>, vector<40x32xf32>,
    %c0_8 = arith.constant 0 : index
    %c0_9 = arith.constant 0 : index
    %9 = vector.load %arg10[%c0_8, %c0_9] : memref<16x16xf32, #tpu.memory_space<vmem>>, vector<16x16xf32>
    %c0_10 = arith.constant 0 : index
    %c0_11 = arith.constant 0 : index
    %10 = vector.load %arg2[%c0_10, %c0_11] : memref<16x32xbf16, #tpu.memory_space<vmem>>, vector<16x32xbf16>
    %c0_12 = arith.constant 0 : index
    %c0_13 = arith.constant 0 : index
    %11 = vector.load %arg4[%c0_12, %c0_13] : memref<32x16xbf16, #tpu.memory_space<vmem>>, vector<32x16xbf16>
    %cst_14 = arith.constant dense<0.000000e+00> : vector<16x16xf32>
    %12 = tpu.matmul %10, %11, %cst_14 {dimension_numbers = #tpu.dot_dimension_numbers<[1], [0], [0], [1], [0, 0, 1, 1], [], []>} : vector<16x32xbf16>, vector<32x16xbf16>, vector<16x16xf32> -> vector<16x16xf32>
    %13 = arith.addf %9, %12 : vector<16x16xf32>
    %c0_15 = arith.constant 0 : index
    %c0_16 = arith.constant 0 : index
    %14 = vector.load %arg10[%c0_15, %c0_16] : memref<16x16xf32, #tpu.memory_space<vmem>>, vector<16x16xf32>
    tpu.vector_store %arg10[%c0_15, %c0_16], %13 {strides = array<i32>} : memref<16x16xf32, #tpu.memory_space<vmem>>, vector<16x16xf32>,
    %c0_i32_17 = arith.constant 0 : i32
    %15 = arith.cmpi eq, %arg0, %c0_i32_17 : i32
    %16 = arith.extui %15 : i1 to i32
    %c0_i32_18 = arith.constant 0 : i32
    %17 = arith.cmpi ne, %16, %c0_i32_18 : i32
    scf.if %17 {
      %c0_19 = arith.constant 0 : index
      %c0_20 = arith.constant 0 : index
      %18 = vector.load %arg5[%c0_19, %c0_20] : memref<40x2xi32, #tpu.memory_space<vmem>>, vector<40x1xi32>
      %c0_21 = arith.constant 0 : index
      %c1 = arith.constant 1 : index
      %19 = vector.load %arg5[%c0_21, %c1] : memref<40x2xi32, #tpu.memory_space<vmem>>, vector<40x1xi32>
      %20 = arith.cmpi slt, %18, %19 : vector<40x1xi32>
      %c0_22 = arith.constant 0 : index
      %c0_23 = arith.constant 0 : index
      %21 = vector.load %arg9[%c0_22, %c0_23] : memref<40x32xf32, #tpu.memory_space<vmem>>, vector<40x32xf32>
      %cst_24 = arith.constant 0.000000e+00 : f32
      %22 = vector.shape_cast %20 : vector<40x1xi1> to vector<40x1xi1>
      %23 = vector.broadcast %22 : vector<40x1xi1> to vector<40x32xi1>
      %24 = vector.broadcast %cst_24 : f32 to vector<40x32xf32>
      %25 = arith.select %23, %21, %24 : vector<40x32xi1>, vector<40x32xf32>
      %c0_25 = arith.constant 0 : index
      %c0_26 = arith.constant 0 : index
      %26 = vector.load %arg9[%c0_25, %c0_26] : memref<40x32xf32, #tpu.memory_space<vmem>>, vector<40x32xf32>
      tpu.vector_store %arg9[%c0_25, %c0_26], %25 {strides = array<i32>} : memref<40x32xf32, #tpu.memory_space<vmem>>, vector<40x32xf32>,
      %c0_27 = arith.constant 0 : index
      %c0_28 = arith.constant 0 : index
      %27 = vector.load %arg6[%c0_27, %c0_28] : memref<16x2xi32, #tpu.memory_space<vmem>>, vector<16x1xi32>
      %c0_29 = arith.constant 0 : index
      %c1_30 = arith.constant 1 : index
      %28 = vector.load %arg6[%c0_29, %c1_30] : memref<16x2xi32, #tpu.memory_space<vmem>>, vector<16x1xi32>
      %29 = arith.cmpi slt, %27, %28 : vector<16x1xi32>
      %c0_31 = arith.constant 0 : index
      %c0_32 = arith.constant 0 : index
      %30 = vector.load %arg10[%c0_31, %c0_32] : memref<16x16xf32, #tpu.memory_space<vmem>>, vector<16x16xf32>
      %cst_33 = arith.constant 0.000000e+00 : f32
      %31 = vector.shape_cast %29 : vector<16x1xi1> to vector<16x1xi1>
      %32 = vector.broadcast %31 : vector<16x1xi1> to vector<16x16xi1>
      %33 = vector.broadcast %cst_33 : f32 to vector<16x16xf32>
      %34 = arith.select %32, %30, %33 : vector<16x16xi1>, vector<16x16xf32>
      %c0_34 = arith.constant 0 : index
      %c0_35 = arith.constant 0 : index
      %35 = vector.load %arg10[%c0_34, %c0_35] : memref<16x16xf32, #tpu.memory_space<vmem>>, vector<16x16xf32>
      tpu.vector_store %arg10[%c0_34, %c0_35], %34 {strides = array<i32>} : memref<16x16xf32, #tpu.memory_space<vmem>>, vector<16x16xf32>,
    } else {
    }
    return
  }
  func.func @transform_0(%arg0: i32) -> (i32, i32) {
    %c0_i32 = arith.constant 0 : i32
    %c0_i32_0 = arith.constant 0 : i32
    return %c0_i32, %arg0 : i32, i32
  }
  func.func @transform_1(%arg0: i32) -> (i32, i32) {
    %c0_i32 = arith.constant 0 : i32
    %c0_i32_0 = arith.constant 0 : i32
    return %c0_i32, %arg0 : i32, i32
  }
  func.func @transform_2(%arg0: i32) -> (i32, i32) {
    %c0_i32 = arith.constant 0 : i32
    %c0_i32_0 = arith.constant 0 : i32
    return %arg0, %c0_i32 : i32, i32
  }
  func.func @transform_3(%arg0: i32) -> (i32, i32) {
    %c0_i32 = arith.constant 0 : i32
    %c0_i32_0 = arith.constant 0 : i32
    return %arg0, %c0_i32 : i32, i32
  }
  func.func @transform_4(%arg0: i32) -> (i32, i32) {
    %c0_i32 = arith.constant 0 : i32
    %c0_i32_0 = arith.constant 0 : i32
    %c0_i32_1 = arith.constant 0 : i32
    return %c0_i32, %c0_i32_0 : i32, i32
  }
  func.func @transform_5(%arg0: i32) -> (i32, i32) {
    %c0_i32 = arith.constant 0 : i32
    %c0_i32_0 = arith.constant 0 : i32
    %c0_i32_1 = arith.constant 0 : i32
    return %c0_i32, %c0_i32_0 : i32, i32
  }
  func.func @transform_6(%arg0: i32) -> (i32, i32) {
    %c0_i32 = arith.constant 0 : i32
    %c0_i32_0 = arith.constant 0 : i32
    %c0_i32_1 = arith.constant 0 : i32
    return %c0_i32, %c0_i32_0 : i32, i32
  }
  func.func @transform_7(%arg0: i32) -> (i32, i32) {
    %c0_i32 = arith.constant 0 : i32
    %c0_i32_0 = arith.constant 0 : i32
    %c0_i32_1 = arith.constant 0 : i32
    return %c0_i32, %c0_i32_0 : i32, i32
  }
  func.func @transform_8(%arg0: i32) -> (i32, i32) {
    %c0_i32 = arith.constant 0 : i32
    %c0_i32_0 = arith.constant 0 : i32
    %c0_i32_1 = arith.constant 0 : i32
    return %c0_i32, %c0_i32_0 : i32, i32
  }
  func.func @transform_9(%arg0: i32) -> (i32, i32) {
    %c0_i32 = arith.constant 0 : i32
    %c0_i32_0 = arith.constant 0 : i32
    %c0_i32_1 = arith.constant 0 : i32
    return %c0_i32, %c0_i32_0 : i32, i32
  }
  func.func @transform_10(%arg0: i32) -> (i32, i32) {
    %c0_i32 = arith.constant 0 : i32
    %c0_i32_0 = arith.constant 0 : i32
    %c0_i32_1 = arith.constant 0 : i32
    return %c0_i32, %c0_i32_0 : i32, i32
  }
}

</mosaic_0001>

<bundles_post_ra>
// kernel: vectorizer_module_forward.1
= control target key start
LH: loop header
LB: loop body
LE: loop exit
PB: predicated region body
PF: predicated region fallthrough
CT: control target
= control target key end

     0   :  { %16 = vsyncpa [#allocation3], 0  ;;  %s479_s17 = smov 127   ;;  %vm39_vm0 = vcmask 261120   ;;  %v480_v4 = vmov 0.0   ;;  %vm481_vm1 = vmmov 0   ;;  %s735_s0 = inlined_call_operand.vmem [shape: bf16[40,32], index: 0, kind: input, shape index: {}]   ;;  %s736_s1 = inlined_call_operand.vmem [shape: bf16[16,32], index: 1, kind: input, shape index: {}]   ;;  %s737_s2 = inlined_call_operand.vmem [shape: bf16[32,32], index: 2, kind: input, shape index: {}]   ;;  %s738_s3 = inlined_call_operand.vmem [shape: bf16[32,16], index: 3, kind: input, shape index: {}]   ;;  %s739_s4 = inlined_call_operand.vmem [shape: s32[40,2], index: 4, kind: input, shape index: {}]   ;;  %s740_s5 = inlined_call_operand.vmem [shape: s32[16,2], index: 5, kind: input, shape index: {}]   ;;  %s741_s6 = inlined_call_operand.vmem [shape: s32[2,1], index: 6, kind: input, shape index: {}]   ;;  %s742_s7 = inlined_call_operand.vmem [shape: f32[2,8], index: 7, kind: input, shape index: {}]   ;;  %s743_s8 = inlined_call_operand.vmem [shape: f32[40,32], index: 8, kind: output, shape index: {0}]   ;;  %s744_s9 = inlined_call_operand.hbm [shape: f32[16,16], index: 9, kind: output, shape index: {1}]   ;;  %s745_s10 = inlined_call_operand.hbm [shape: f32[2,8], index: 10, kind: output, shape index: {2}]  }
   0x1   :  { %v545_v0 = vld [vmem:[%s740_s5] sm:$0xff]  ;;  %v559_v2 = vld [vmem:[%s740_s5 + $0x8] sm:$0xff]  ;;  %413 = vmatprep.subr.bf16.mxu1 %v480_v4  ;;  %389 = vmatprep.subr.bf16.mxu0 %v480_v4  ;;  %40 = vst.msk [vmem:[%s743_s8] sm:$0xff] %vm39_vm0, %v480_v4  ;;  %41 = vst.msk [vmem:[%s743_s8 + $0x8] sm:$0xff] %vm39_vm0, %v480_v4  ;;  %v482_v7 = vmov 0  }
   0x2   :  { %v550_v1 = vld [vmem:[%s739_s4] sm:$0xff]  ;;  %313 = vrot.lane.b32.xlu0 %v545_v0, %s479_s17  ;;  %v564_v3 = vld [vmem:[%s739_s4 + $0x8] sm:$0xff]  ;;  %42 = vst.msk [vmem:[%s743_s8 + $0x10] sm:$0xff] %vm39_vm0, %v480_v4  ;;  %401 = vmatprep.mubr.msk.bf16.mxu1 %vm481_vm1, %v480_v4 }
   0x3   :  { %256 = vrot.lane.b32.xlu1 %v550_v1, %s479_s17  ;;  %43 = vst.msk [vmem:[%s743_s8 + $0x18] sm:$0xff] %vm39_vm0, %v480_v4  ;;  %44 = vst.msk [vmem:[%s743_s8 + $0x20] sm:$0xff] %vm39_vm0, %v480_v4  ;;  %v427_v5 = vld [vmem:[%s737_s2 + $0x8] sm:$0xff]   ;;  %393 = vmatprep.mubr.msk.bf16.mxu0 %vm481_vm1, %v480_v4 }
   0x4   :  { %v254_v6 = vld [vmem:[%s739_s4 + $0x18] sm:$0xff]  ;;  %426 = vset.pattern.permute.xlu0 %v482_v7  ;;  %425 = vset.pattern.permute.xlu1 %v482_v7  ;;  %v253_v8 = vld [vmem:[%s739_s4 + $0x10] sm:$0xff]  ;;  %v428_v9 = vld [vmem:[%s737_s2] sm:$0xff]  }
   0x5   :  { %415 = vmatpush3.bf16.msra.mxu1 %v427_v5  ;;  %390 = vmatpush3.bf16.msra.mxu0 %v427_v5  ;;  %v255_v10 = vld [vmem:[%s739_s4 + $0x20] sm:$0xff]  ;;  %v429_v11 = vld [vmem:[%s735_s0 + $0x10] ss:$0 sps:$4 sm:$0xff]   ;;  %v430_v12 = vld [vmem:[%s738_s3 + $0x8] sm:$0xff]  }
   0x6   :  { %315 = vrot.lane.b32.xlu0 %v559_v2, %s479_s17  ;;  %414 = vmatprep.subr.bf16.mxu1 %v480_v4  ;;  %v431_v13 = vld [vmem:[%s735_s0] sm:$0xff]  }
   0x7   :  { %258 = vrot.lane.b32.xlu1 %v564_v3, %s479_s17  ;;  %391 = vmatprep.subr.bf16.mxu0 %v480_v4 }
   0x9   :  { %416 = vmatpush3.bf16.msra.mxu1 %v428_v9  ;;  %392 = vmatpush3.bf16.msra.mxu0 %v428_v9 }
   0xa   :  { %260 = vrot.lane.b32.xlu0 %v253_v8, %s479_s17  ;;  %405 = vmatprep.subr.bf16.mxu1 %v480_v4 }
   0xb   :  { %262 = vrot.lane.b32.xlu1 %v254_v6, %s479_s17 }
   0xc   :  { %17 = vsyncpa [#allocation5], 0  ;;  %402 = vmatmul.mubr.msk.bf16.vlgmr.msra.gmra.mxu1 %vm39_vm0, %v429_v11  ;;  %v50_v14 = vld [vmem:[%s741_s6] sm:$0x3]  ;;  %394 = vmatmul.mubr.msk.bf16.vlgmr.msra.gmra.mxu0 %vm39_vm0, %v431_v13  ;;  %v434_v17 = vld [vmem:[%s735_s0 + $0x8] sm:$0xff]   ;;  %vm45_vm2 = vcmask 130048   ;;  %v48_v32 = vlaneseq }
   0xd   :  { %406 = vmatpush3.bf16.msra.mxu1 %v430_v12  ;;  %v432_v15 = vld [vmem:[%s738_s3] sm:$0xff]   ;;  %409 = vmatprep.mubr.msk.bf16.mxu1 %vm481_vm1, %v480_v4  ;;  %46 = vst.msk [vmem:[#allocation2] sm:$0xff] %vm45_vm2, %v480_v4  ;;  %47 = vst.msk [vmem:[#allocation2 + $0x8] sm:$0xff] %vm45_vm2, %v480_v4  ;;  %s483_s0 = smov [#allocation4]   ;;  %vm57_vm10 = vcmask 58368  }
   0xe   :  { %264 = vrot.lane.b32.xlu0 %v255_v10, %s479_s17  ;;  %407 = vmatprep.subr.bf16.mxu1 %v480_v4  ;;  %v433_v16 = vld [vmem:[%s736_s1] sm:$0xff]   ;;  %v49_v33 = vand.u32 127, %v48_v32  ;;  %s355_s1 = sshll.u32 %s483_s0, 4  ;;  %s356_s1 = int_to_ptr.vmem [resolvable:$true] %s355_s1 }
   0xf   :  { %397 = vmatprep.mubr.msk.bf16.mxu0 %vm481_vm1, %v480_v4  ;;  %52 = vperm.xlu1 %425, %v50_v14   ;;  %v55_v34 = vld [vmem:[%s742_s7] sm:$0x3]  ;;  %s435_s12 = scalar_lea.vmem %s356_s1, 32  ;;  %p440_p1 = scmp.lt.s32.totalorder %s356_s1, %s356_s1 }
  0x10   :  { %p436_p0 = scmp.ne.s32.totalorder %s356_s1, %s435_s12  ;;  %p441_p2 = scmp.lt.s32.totalorder %s435_s12, %s435_s12 }
  0x11   :  { %408 = vmatpush3.bf16.msra.mxu1 %v432_v15 }
  0x12   :  { %p442_p3 = por %p441_p2, %p440_p1 }
  0x14   :  { %410 = vmatmul.mubr.msk.bf16.vlgmr.msra.gmra.mxu1 %vm39_vm0, %v433_v16  ;;  %398 = vmatmul.mubr.msk.bf16.gmra.mxu0 %vm39_vm0, %v434_v17  ;;  %p443_p4 = pnand %p442_p3, %p436_p0 }
  0x74   :  { %v314_v18 = vpop.permute.xlu0 %313 }
  0x75   :  { %v257_v19 = vpop.permute.xlu1 %256  ;;  %vm317_vm3 = vcmp.lt.s32.totalorder %v545_v0, %v314_v18 }
  0x76   :  { %v321_v20 = vsel %vm317_vm3, 1, %v482_v7  ;;  %vm266_vm4 = vcmp.lt.s32.totalorder %v550_v1, %v257_v19 }
  0x77   :  { %324 = vperm.xlu0 %426, %v321_v20   ;;  %v276_v25 = vsel %vm266_vm4, 1, %v482_v7 }
  0x78   :  { %v316_v21 = vpop.permute.xlu0 %315 }
  0x79   :  { %v259_v22 = vpop.permute.xlu1 %258  ;;  %vm318_vm5 = vcmp.lt.s32.totalorder %v559_v2, %v316_v21 }
  0x7a   :  { %vm267_vm6 = vcmp.lt.s32.totalorder %v564_v3, %v259_v22  ;;  %v322_v23 = vsel %vm318_vm5, 1, %v482_v7 }
  0x7b   :  { %v277_v24 = vsel %vm267_vm6, 1, %v482_v7  ;;  %327 = vperm.xlu1 %425, %v322_v23  }
  0x7c   :  { %285 = vperm.xlu0 %426, %v277_v24   ;;  %v261_v27 = vpop.permute.xlu0 %260 }
  0x7d   :  { %v263_v26 = vpop.permute.xlu1 %262  ;;  %vm268_vm8 = vcmp.lt.s32.totalorder %v253_v8, %v261_v27 }
  0x7e   :  { %vm269_vm7 = vcmp.lt.s32.totalorder %v254_v6, %v263_v26  ;;  %v278_v29 = vsel %vm268_vm8, 1, %v482_v7 }
  0x7f   :  { %v279_v28 = vsel %vm269_vm7, 1, %v482_v7  ;;  %282 = vperm.xlu1 %425, %v276_v25  }
  0x80   :  { %291 = vperm.xlu0 %426, %v279_v28   ;;  %v265_v30 = vpop.permute.xlu0 %264 }
  0x81   :  { %vm270_vm9 = vcmp.lt.s32.totalorder %v255_v10, %v265_v30 }
  0x82   :  { %v280_v31 = vsel %vm270_vm9, 1, %v482_v7 }
  0x83   :  { %288 = vperm.xlu1 %425, %v278_v29  }
  0x87   :  { %294 = vperm.xlu1 %425, %v280_v31  }
  0x8a   :  { %v53_v35 = vpop.permute.xlu1 %52 }
  0x8b   :  { %vm54_vm11 = vcmp.lt.s32.totalorder %v49_v33, %v53_v35 }
  0x8c   :  { %v56_v36 = vsel %vm54_vm11, %v55_v34, 0.0 }
  0x8d   :  { %58 = vst.msk [vmem:[#allocation4] sm:$0x3] %vm57_vm10, %v56_v36 }
  0x8e   :  { %446 = shalt.err (!%p443_p4)
}
  0x8f   :  { %358 = dma.vmem_to_hbm [thread:$0]  %s356_s1, 32, %s745_s10, [#allocation5]   ;;  %v63_v37 = vld [vmem:[%s743_s8 + $0x20] sm:$0xff]  ;;  %v60_v45 = vld [vmem:[%s743_s8 + $0x8] sm:$0xff]  ;;  %v61_v52 = vld [vmem:[%s743_s8 + $0x10] sm:$0xff] }
  0x90   :  { %v59_v38 = vld [vmem:[%s743_s8] sm:$0xff]  ;;  %v175_v58 = vld [vmem:[#allocation2 + $0x8] sm:$0xff]  ;;  %v62_v60 = vld [vmem:[%s743_s8 + $0x18] sm:$0xff]  ;;  %s484_s30 = smov [#allocation2]  }
  0x91   :  { %v174_v50 = vld [vmem:[#allocation2] sm:$0xff]  ;;  %s342_s6 = sshll.u32 %s484_s30, 4  ;;  %s343_s6 = int_to_ptr.vmem [resolvable:$true] %s342_s6 }
  0x92   :  { %s455_s14 = scalar_lea.vmem %s343_s6, 256  ;;  %p460_p6 = scmp.lt.s32.totalorder %s343_s6, %s343_s6 }
  0x93   :  { %p456_p5 = scmp.ne.s32.totalorder %s343_s6, %s455_s14  ;;  %p461_p7 = scmp.lt.s32.totalorder %s455_s14, %s455_s14 }
  0x95   :  { %p462_p8 = por %p461_p7, %p460_p6 }
  0x97   :  { %p463_p9 = pnand %p462_p8, %p456_p5 }
  0xcc   :  { %v158_v39 = vpop.f32.mrf.mxu1  ;;  %v142_v41 = vpop.f32.mrf.mxu0 }
  0xcd   :  { %v168_v40 = vadd.f32 %v158_v39, %v63_v37  ;;  %v164_v43 = vadd.f32 %v142_v41, %v59_v38 }
  0xce   :  { %v403_v42 = vpop.f32.mrf.mxu1  ;;  %v395_v44 = vpop.f32.mrf.mxu0 }
  0xcf   :  { %173 = vst.msk [vmem:[%s743_s8 + $0x20] sm:$0xff] %vm39_vm0, %v168_v40  ;;  %169 = vst.msk [vmem:[%s743_s8] sm:$0xff] %vm39_vm0, %v164_v43 }
  0xd0   :  { %v161_v46 = vpop.f32.mrf.mxu1  ;;  %v145_v47 = vpop.f32.mrf.mxu0 }
  0xd1   :  { %v165_v49 = vadd.f32 %v145_v47, %v60_v45 }
  0xd2   :  { %v404_v48 = vpop.f32.mrf.mxu1  ;;  %v396_v51 = vpop.f32.mrf.mxu0 }
  0xd3   :  { %170 = vst.msk [vmem:[%s743_s8 + $0x8] sm:$0xff] %vm39_vm0, %v165_v49 }
  0xd4   :  { %v236_v53 = vpop.f32.mrf.mxu1  ;;  %v150_v55 = vpop.f32.mrf.mxu0 }
  0xd5   :  { %v243_v54 = vadd.f32 %v236_v53, %v174_v50  ;;  %v166_v57 = vadd.f32 %v150_v55, %v61_v52 }
  0xd6   :  { %v411_v56 = vpop.f32.mrf.mxu1  ;;  %v399_v59 = vpop.f32.mrf.mxu0 }
  0xd7   :  { %246 = vst.msk [vmem:[#allocation2] sm:$0xff] %vm45_vm2, %v243_v54 }
  0xd8   :  { %171 = vst.msk [vmem:[%s743_s8 + $0x10] sm:$0xff] %vm39_vm0, %v166_v57  ;;  %v239_v61 = vpop.f32.mrf.mxu1  ;;  %v153_v63 = vpop.f32.mrf.mxu0 }
  0xd9   :  { %v244_v62 = vadd.f32 %v239_v61, %v175_v58  ;;  %v167_v0 = vadd.f32 %v153_v63, %v62_v60 }
  0xda   :  { %v412_v1 = vpop.f32.mrf.mxu1  ;;  %v400_v2 = vpop.f32.mrf.mxu0  ;;  %v272_v6 = vld [vmem:[%s743_s8 + $0x8] sm:$0xff] }
  0xdb   :  { %247 = vst.msk [vmem:[#allocation2 + $0x8] sm:$0xff] %vm45_vm2, %v244_v62 }
  0xdc   :  { %172 = vst.msk [vmem:[%s743_s8 + $0x18] sm:$0xff] %vm39_vm0, %v167_v0 }
  0xde   :  { %v319_v3 = vld [vmem:[#allocation2] sm:$0xff] }
  0xe2   :  { %v320_v7 = vld [vmem:[#allocation2 + $0x8] sm:$0xff] }
  0xe3   :  { %v274_v12 = vld [vmem:[%s743_s8 + $0x18] sm:$0xff] }
  0xf2   :  { %v325_v4 = vpop.permute.xlu0 %324 }
  0xf3   :  { %vm329_vm12 = vcmp.eq.s32.totalorder %v325_v4, 1 }
  0xf4   :  { %v331_v5 = vsel %vm329_vm12, %v319_v3, 0.0 }
  0xf5   :  { %333 = vst.msk [vmem:[#allocation2] sm:$0xff] %vm45_vm2, %v331_v5 }
  0xf6   :  { %v328_v9 = vpop.permute.xlu1 %327 }
  0xf7   :  { %v286_v8 = vpop.permute.xlu0 %285  ;;  %vm330_vm14 = vcmp.eq.s32.totalorder %v328_v9, 1 }
  0xf8   :  { %vm297_vm13 = vcmp.eq.s32.totalorder %v286_v8, 1  ;;  %v332_v11 = vsel %vm330_vm14, %v320_v7, 0.0 }
  0xf9   :  { %v302_v10 = vsel %vm297_vm13, %v272_v6, 0.0  ;;  %334 = vst.msk [vmem:[#allocation2 + $0x8] sm:$0xff] %vm45_vm2, %v332_v11 }
  0xfa   :  { %307 = vst.msk [vmem:[%s743_s8 + $0x8] sm:$0xff] %vm39_vm0, %v302_v10  ;;  %v283_v14 = vpop.permute.xlu1 %282 }
  0xfb   :  { %v292_v13 = vpop.permute.xlu0 %291 }
  0xfc   :  { %466 = shalt.err (!%p463_p9)
}
  0xfd   :  { %s485_s15 = smov 128   ;;  %s486_s16 = smov 8   ;;  %vm299_vm15 = vcmp.eq.s32.totalorder %v292_v13, 1  ;;  %v271_v15 = vld [vmem:[%s743_s8] sm:$0xff]  ;;  %vm296_vm1 = vcmp.eq.s32.totalorder %v283_v14, 1  ;;  %v273_v18 = vld [vmem:[%s743_s8 + $0x10] sm:$0xff] }
  0xfe   :  { %348 = dma.vmem_to_hbm [thread:$0]  %s343_s6, 256, %s744_s9, [#allocation3], %s485_s15, %s485_s15, %s486_s16   ;;  %v304_v16 = vsel %vm299_vm15, %v274_v12, 0.0  ;;  %v301_v17 = vsel %vm296_vm1, %v271_v15, 0.0  ;;  %v289_v19 = vpop.permute.xlu1 %288 }
  0xff   :  { %309 = vst.msk [vmem:[%s743_s8 + $0x18] sm:$0xff] %vm39_vm0, %v304_v16  ;;  %306 = vst.msk [vmem:[%s743_s8] sm:$0xff] %vm39_vm0, %v301_v17  ;;  %vm298_vm2 = vcmp.eq.s32.totalorder %v289_v19, 1  ;;  %v275_v22 = vld [vmem:[%s743_s8 + $0x20] sm:$0xff] }
 0x100   :  { %v303_v20 = vsel %vm298_vm2, %v273_v18, 0.0 }
 0x101   :  { %308 = vst.msk [vmem:[%s743_s8 + $0x10] sm:$0xff] %vm39_vm0, %v303_v20 }
 0x102   :  { %v295_v21 = vpop.permute.xlu1 %294 }
 0x103   :  { %vm300_vm3 = vcmp.eq.s32.totalorder %v295_v21, 1 }
 0x104   :  { %v305_v23 = vsel %vm300_vm3, %v275_v22, 0.0 }
 0x105   :  { %310 = vst.msk [vmem:[%s743_s8 + $0x20] sm:$0xff] %vm39_vm0, %v305_v23 }
 0x106   :  { %475 = dma.done.wait [#allocation3], 256  }
 0x107   :  { %476 = vsyncadd [#allocation3], 4294967040 }
 0x108   :  { %477 = dma.done.wait [#allocation5], 32  }
 0x109   :  { %478 = vsyncadd [#allocation5], 4294967264 }
 0x10a   :  { %367 = vsyncpa [#allocation3], 1 }
 0x10b   :  { %368 = vsyncpa [#allocation5], 1 }

</bundles_post_ra>
